<compile_context>
chip_gen: v7x
topology: tpu7x:2x2x1
jax: 0.10.0
libtpu: 0.0.40
codegen_flags: <defaults>
</compile_context>

<pallas_src>
import functools

import jax
import jax.numpy as jnp
from jax.experimental import pallas as pl
from jax.experimental.pallas import tpu as pltpu


def _round_up(x, m):
    return (x + m - 1) // m * m


def _im2col(x, k, stride, padding):
    """PyTorch nn.Unfold equivalent. x: (B, C, H, W) -> (B, C*k*k, L)."""
    B, C, H, W = x.shape
    xp = jnp.pad(x, ((0, 0), (0, 0), (padding, padding), (padding, padding)))
    out_h = (H + 2 * padding - k) // stride + 1
    out_w = (W + 2 * padding - k) // stride + 1
    cols = []
    for i in range(k):
        for j in range(k):
            patch = xp[:, :, i:i + stride * out_h:stride, j:j + stride * out_w:stride]
            cols.append(patch)  # (B, C, out_h, out_w)
    # stack -> (B, C, k*k, out_h, out_w); flatten channel-major like torch Unfold
    col = jnp.stack(cols, axis=2).reshape(B, C * k * k, out_h * out_w)
    return col, out_h, out_w


def _conv_gemm_kernel(w_ref, col_ref, b_ref, o_ref, acc_ref):
    # w_ref:   (TO, TK)  bf16 weight tile
    # col_ref: (TK, TL)  bf16 im2col tile (batch dim squeezed away)
    # b_ref:   (TO, 1)   f32 bias tile
    # o_ref:   (TO, TL)  output tile (batch dim squeezed away)
    # acc_ref: (TO, TL)  f32 accumulator scratch, resident across the K axis
    kk = pl.program_id(3)

    @pl.when(kk == 0)
    def _():
        acc_ref[...] = jnp.zeros_like(acc_ref)

    acc_ref[...] += jnp.dot(w_ref[...], col_ref[...],
                            preferred_element_type=jnp.float32)

    @pl.when(kk == pl.num_programs(3) - 1)
    def _():
        o_ref[...] = (acc_ref[...] + b_ref[...]).astype(o_ref.dtype)


@functools.partial(jax.jit, static_argnames=("kernel_size", "stride", "padding"))
def conv2d_pallas(x, weight, bias, *, kernel_size=3, stride=1, padding=1):
    """Forward pass matching the PyTorch Conv2d module (im2col + GEMM + bias)."""
    B, C, H, W = x.shape
    O = weight.shape[0]
    k = kernel_size
    CKK = C * k * k

    # im2col in bf16 so the (B, CKK, L) col stream costs half the HBM bytes.
    col, out_h, out_w = _im2col(x.astype(jnp.bfloat16), k, stride, padding)
    L = out_h * out_w

    # ---- tile sizes: 128-aligned lanes, >=16 sublanes; sized for v7x 64 MiB VMEM
    TL = min(512, _round_up(L, 128))     # lane tile over L (multiple of 128)
    TO = min(128, _round_up(O, 16))      # sublane tile over O
    TK = min(512, _round_up(CKK, 128))   # K (reduction) tile
    L_pad = _round_up(L, TL)
    O_pad = _round_up(O, TO)
    CKK_pad = _round_up(CKK, TK)

    w2d = jnp.pad(weight.reshape(O, CKK).astype(jnp.bfloat16),
                  ((0, O_pad - O), (0, CKK_pad - CKK)))
    col_p = jnp.pad(col, ((0, 0), (0, CKK_pad - CKK), (0, L_pad - L)))
    b2d = jnp.pad(bias.astype(jnp.float32).reshape(O, 1), ((0, O_pad - O), (0, 0)))

    grid = (B, O_pad // TO, L_pad // TL, CKK_pad // TK)

    out = pl.pallas_call(
        _conv_gemm_kernel,
        out_shape=jax.ShapeDtypeStruct((B, O_pad, L_pad), x.dtype),
        grid_spec=pltpu.PrefetchScalarGridSpec(
            num_scalar_prefetch=0,
            grid=grid,
            in_specs=[
                pl.BlockSpec((TO, TK), lambda b, o, l, kk: (o, kk)),
                pl.BlockSpec((None, TK, TL), lambda b, o, l, kk: (b, kk, l)),
                pl.BlockSpec((TO, 1), lambda b, o, l, kk: (o, 0)),
            ],
            out_specs=pl.BlockSpec((None, TO, TL), lambda b, o, l, kk: (b, o, l)),
            scratch_shapes=[pltpu.VMEM((TO, TL), jnp.float32)],
        ),
        compiler_params=pltpu.CompilerParams(
            dimension_semantics=("parallel", "parallel", "parallel", "arbitrary")),
    )(w2d, col_p, b2d)

    out = out[:, :O, :L].reshape(B, O, out_h, out_w)
    return out


def init_params(key, in_channel, out_channel, kernel_size=3, use_bias=True):
    """Deterministic init mirroring the PyTorch module:
    kaiming_normal_(weight, mode='fan_out', nonlinearity='relu'); bias = ones."""
    fan_out = out_channel * kernel_size * kernel_size
    std = (2.0 / fan_out) ** 0.5
    weight = std * jax.random.normal(
        key, (out_channel, in_channel, kernel_size, kernel_size), jnp.float32)
    if use_bias:
        bias = jnp.ones((out_channel,), jnp.float32)
    else:
        bias = jnp.zeros((out_channel,), jnp.float32)
    return weight, bias


if __name__ == "__main__":
    B, C, H, W = 2, 4, 16, 16
    O, k, stride, padding = 8, 3, 1, 1

    key = jax.random.PRNGKey(0)
    kx, kw = jax.random.split(key)
    x = jax.random.normal(kx, (B, C, H, W), jnp.float32)
    weight, bias = init_params(kw, C, O, kernel_size=k, use_bias=True)

    out = conv2d_pallas(x, weight, bias,
                        kernel_size=k, stride=stride, padding=padding)
    out = jax.block_until_ready(out)

    # References (same im2col + einsum).
    col, oh, ow = _im2col(x, k, stride, padding)
    w2 = weight.reshape(O, -1)
    # Reference at the kernel's MXU input precision (bf16 operands, f32 accumulate).
    ref_bf16 = (jnp.einsum("ok,bkl->bol",
                           w2.astype(jnp.bfloat16), col.astype(jnp.bfloat16),
                           preferred_element_type=jnp.float32)
                + bias[None, :, None]).reshape(B, O, oh, ow)
    # Full-f32 reference, loose tolerance (kernel casts operands to bf16).
    ref_f32 = (jnp.einsum("ok,bkl->bol", w2, col,
                          preferred_element_type=jnp.float32)
               + bias[None, :, None]).reshape(B, O, oh, ow)

    assert out.shape == (B, O, oh, ow)
    assert jnp.allclose(out, ref_bf16, atol=1e-3, rtol=1e-3)
    assert jnp.allclose(out, ref_f32, atol=1.5e-1, rtol=1.5e-1)

    print("KERNEL_OK")
</pallas_src>

<mosaic_0001>
module attributes {stable_mosaic.version = 11 : i64} {
  func.func @_conv_gemm_kernel(%arg0: i32, %arg1: i32, %arg2: i32, %arg3: i32, %arg4: memref<16x128xbf16, #tpu.memory_space<vmem>>, %arg5: memref<1x128x256xbf16, #tpu.memory_space<vmem>>, %arg6: memref<16x1xf32, #tpu.memory_space<vmem>>, %arg7: memref<1x16x256xf32, #tpu.memory_space<vmem>>, %arg8: memref<16x256xf32, #tpu.memory_space<vmem>>) attributes {dimension_semantics = [#tpu.dimension_semantics<parallel>, #tpu.dimension_semantics<parallel>, #tpu.dimension_semantics<parallel>, #tpu.dimension_semantics<arbitrary>], iteration_bounds = array<i64: 2, 1, 1, 1>, scalar_prefetch = 0 : i64, scratch_operands = 1 : i64, tpu.core_type = #tpu.core_type<tc>, window_params = [{transform_indices = @transform_0, window_bounds = array<i64: 16, 128>}, {transform_indices = @transform_1, window_bounds = array<i64: 1, 128, 256>}, {transform_indices = @transform_2, window_bounds = array<i64: 16, 1>}, {transform_indices = @transform_3, window_bounds = array<i64: 1, 16, 256>}]} {
    %c0_i32 = arith.constant 0 : i32
    %0 = arith.cmpi eq, %arg3, %c0_i32 : i32
    %1 = arith.extui %0 : i1 to i32
    %c0_i32_0 = arith.constant 0 : i32
    %2 = arith.cmpi ne, %1, %c0_i32_0 : i32
    scf.if %2 {
      %cst_11 = arith.constant 0.000000e+00 : f32
      %13 = vector.broadcast %cst_11 : f32 to vector<16x256xf32>
      %c0_12 = arith.constant 0 : index
      %c0_13 = arith.constant 0 : index
      %14 = vector.load %arg8[%c0_12, %c0_13] : memref<16x256xf32, #tpu.memory_space<vmem>>, vector<16x256xf32>
      tpu.vector_store %arg8[%c0_12, %c0_13], %13 {strides = array<i32>} : memref<16x256xf32, #tpu.memory_space<vmem>>, vector<16x256xf32>,
    } else {
    }
    %c0 = arith.constant 0 : index
    %c0_1 = arith.constant 0 : index
    %3 = vector.load %arg8[%c0, %c0_1] : memref<16x256xf32, #tpu.memory_space<vmem>>, vector<16x256xf32>
    %c0_2 = arith.constant 0 : index
    %c0_3 = arith.constant 0 : index
    %4 = vector.load %arg4[%c0_2, %c0_3] : memref<16x128xbf16, #tpu.memory_space<vmem>>, vector<16x128xbf16>
    %c0_4 = arith.constant 0 : index
    %c0_5 = arith.constant 0 : index
    %c0_6 = arith.constant 0 : index
    %5 = vector.load %arg5[%c0_4, %c0_5, %c0_6] : memref<1x128x256xbf16, #tpu.memory_space<vmem>>, vector<1x128x256xbf16>
    %6 = vector.shape_cast %5 : vector<1x128x256xbf16> to vector<128x256xbf16>
    %cst = arith.constant dense<0.000000e+00> : vector<16x256xf32>
    %7 = tpu.matmul %4, %6, %cst {dimension_numbers = #tpu.dot_dimension_numbers<[1], [0], [0], [1], [0, 0, 1, 1], [], []>} : vector<16x128xbf16>, vector<128x256xbf16>, vector<16x256xf32> -> vector<16x256xf32>
    %8 = arith.addf %3, %7 : vector<16x256xf32>
    %c0_7 = arith.constant 0 : index
    %c0_8 = arith.constant 0 : index
    %9 = vector.load %arg8[%c0_7, %c0_8] : memref<16x256xf32, #tpu.memory_space<vmem>>, vector<16x256xf32>
    tpu.vector_store %arg8[%c0_7, %c0_8], %8 {strides = array<i32>} : memref<16x256xf32, #tpu.memory_space<vmem>>, vector<16x256xf32>,
    %c0_i32_9 = arith.constant 0 : i32
    %10 = arith.cmpi eq, %arg3, %c0_i32_9 : i32
    %11 = arith.extui %10 : i1 to i32
    %c0_i32_10 = arith.constant 0 : i32
    %12 = arith.cmpi ne, %11, %c0_i32_10 : i32
    scf.if %12 {
      %c0_11 = arith.constant 0 : index
      %c0_12 = arith.constant 0 : index
      %13 = vector.load %arg8[%c0_11, %c0_12] : memref<16x256xf32, #tpu.memory_space<vmem>>, vector<16x256xf32>
      %c0_13 = arith.constant 0 : index
      %c0_14 = arith.constant 0 : index
      %14 = vector.load %arg6[%c0_13, %c0_14] : memref<16x1xf32, #tpu.memory_space<vmem>>, vector<16x1xf32>
      %15 = vector.broadcast %14 : vector<16x1xf32> to vector<16x256xf32>
      %16 = arith.addf %13, %15 : vector<16x256xf32>
      %c0_15 = arith.constant 0 : index
      %c0_16 = arith.constant 0 : index
      %c0_17 = arith.constant 0 : index
      %17 = vector.load %arg7[%c0_15, %c0_16, %c0_17] : memref<1x16x256xf32, #tpu.memory_space<vmem>>, vector<1x16x256xf32>
      %18 = vector.shape_cast %17 : vector<1x16x256xf32> to vector<16x256xf32>
      %19 = vector.shape_cast %16 : vector<16x256xf32> to vector<1x16x256xf32>
      tpu.vector_store %arg7[%c0_15, %c0_16, %c0_17], %19 {strides = array<i32>} : memref<1x16x256xf32, #tpu.memory_space<vmem>>, vector<1x16x256xf32>,
    } else {
    }
    return
  }
  func.func @transform_0(%arg0: i32, %arg1: i32, %arg2: i32, %arg3: i32) -> (i32, i32) {
    %c0_i32 = arith.constant 0 : i32
    return %arg1, %arg3 : i32, i32
  }
  func.func @transform_1(%arg0: i32, %arg1: i32, %arg2: i32, %arg3: i32) -> (i32, i32, i32) {
    %c0_i32 = arith.constant 0 : i32
    return %arg0, %arg3, %arg2 : i32, i32, i32
  }
  func.func @transform_2(%arg0: i32, %arg1: i32, %arg2: i32, %arg3: i32) -> (i32, i32) {
    %c0_i32 = arith.constant 0 : i32
    %c0_i32_0 = arith.constant 0 : i32
    return %arg1, %c0_i32 : i32, i32
  }
  func.func @transform_3(%arg0: i32, %arg1: i32, %arg2: i32, %arg3: i32) -> (i32, i32, i32) {
    %c0_i32 = arith.constant 0 : i32
    return %arg0, %arg1, %arg2 : i32, i32, i32
  }
}

</mosaic_0001>

<bundles_post_ra>
// kernel: conv2d_pallas.1
= control target key start
LH: loop header
LB: loop body
LE: loop exit
PB: predicated region body
PF: predicated region fallthrough
CT: control target
= control target key end

     0   :  { %s785_s12 = smov 0   ;;  %s787_s13 = smov 0   ;;  %s849_s0 = inlined_call_operand.vmem [shape: bf16[16,128], index: 0, kind: input, shape index: {}]   ;;  %s850_s1 = inlined_call_operand.vmem [shape: bf16[2,128,256], index: 1, kind: input, shape index: {}]   ;;  %s851_s2 = inlined_call_operand.vmem [shape: f32[16,1], index: 2, kind: input, shape index: {}]   ;;  %s852_s3 = inlined_call_operand.vmem [shape: f32[2,16,256], index: 3, kind: output, shape index: {}]  }
   0x1   :  { %s789_s14 = smov 0  }
   0x2 LB: > { %s39_s15 = sadd.s32 1, %s758_s13  ;;  %p663_p0 = scmp.ge.s32.totalorder %s762_s14, 1  ;;  %s762_s14 = sphi %s789_s14, %s13_s14   ;;  %s758_s13 = sphi %s787_s13, %s854_s13   ;;  %s754_s12 = sphi %s785_s12, %s853_s12  }
   0x3   : > { %p41_p1 = scmp.ge.s32.totalorder %s39_s15, 2  ;;  %p209_p2 = scmp.lt.s32.totalorder %s762_s14, 3 }
   0x5   : > { %s856_s15 = smov (%p41_p1, %s39_s15), 0  ;;  %p210_p3 = pnand %p663_p0, %p209_p2 }
   0x6   : > { %p275_p4 = scmp.lt.s32.totalorder (!%p210_p3), %s754_s12, 1  ;;  %v764_v0 = vmov (!%p210_p3), 0   ;;  %v486_v1 = vld [vmem:[%s851_s2] sm:$0xff] (!%p210_p3)  ;;  %v487_v2 = vld [vmem:[%s851_s2 + $0x8] sm:$0xff] (!%p210_p3) }
   0x7   : > { %213 = sbr.rel (%p210_p3) target bundleno = 268 (0x10c), region = 32  ;;  %460 = vmatprep.mubr.bf16.mxu0 (!%p210_p3), %v764_v0  ;;  %714 = vset.pattern.permute.xlu0 (!%p210_p3), %v764_v0  ;;  %v739_v19 = vld [vmem:[%s849_s0] sm:$0xff] (!%p210_p3)  }
   0x8   : > { %490 = vperm.xlu0 (!%p210_p3), %714, %v486_v1  }
   0xc   : > { %495 = vperm.xlu0 (!%p210_p3), %714, %v487_v2  }
   0xe   : > { %s858_s12 = smov (!%p275_p4, %s754_s12), 1 }
   0xf   : > { %s687_s20 = sshll.u32 %s858_s12, 7  ;;  %s688_s26 = sshll.u32 %s858_s12, 5 }
  0x10   : > { %s815_s23 = scalar_lea.vmem %s850_s1, %s687_s20  ;;  %s308_s29 = scalar_lea.vmem %s852_s3, %s688_s26 }
  0x11   : > { %v715_v3 = vld [vmem:[%s815_s23 + $0x4] ss:$8 sps:$4 sm:$0xff]   ;;  %v717_v4 = vld [vmem:[%s815_s23] ss:$8 sps:$4 sm:$0xff]   ;;  %v718_v5 = vld [vmem:[%s815_s23 + $0x14] ss:$8 sps:$4 sm:$0xff]  }
  0x12   : > { %428 = vmatprep.subr.bf16.mxu0 %v715_v3  ;;  %v720_v6 = vld [vmem:[%s815_s23 + $0x10] ss:$8 sps:$4 sm:$0xff]   ;;  %v721_v7 = vld [vmem:[%s815_s23 + $0x24] ss:$8 sps:$4 sm:$0xff]   ;;  %v723_v8 = vld [vmem:[%s815_s23 + $0x20] ss:$8 sps:$4 sm:$0xff]  }
  0x13   : > { %429 = vmatpush1.bf16.msra.mxu0 %v717_v4  ;;  %v724_v9 = vld [vmem:[%s815_s23 + $0x34] ss:$8 sps:$4 sm:$0xff]   ;;  %v726_v10 = vld [vmem:[%s815_s23 + $0x30] ss:$8 sps:$4 sm:$0xff]   ;;  %v727_v11 = vld [vmem:[%s815_s23 + $0x44] ss:$8 sps:$4 sm:$0xff]  }
  0x14   : > { %430 = vmatprep.subr.bf16.mxu0 %v718_v5  ;;  %v729_v12 = vld [vmem:[%s815_s23 + $0x40] ss:$8 sps:$4 sm:$0xff]   ;;  %v730_v13 = vld [vmem:[%s815_s23 + $0x54] ss:$8 sps:$4 sm:$0xff]   ;;  %v732_v14 = vld [vmem:[%s815_s23 + $0x50] ss:$8 sps:$4 sm:$0xff]  }
  0x15   : > { %v733_v15 = vld [vmem:[%s815_s23 + $0x64] ss:$8 sps:$4 sm:$0xff]   ;;  %v735_v16 = vld [vmem:[%s815_s23 + $0x60] ss:$8 sps:$4 sm:$0xff]   ;;  %v736_v17 = vld [vmem:[%s815_s23 + $0x74] ss:$8 sps:$4 sm:$0xff]  }
  0x16   : > { %v738_v18 = vld [vmem:[%s815_s23 + $0x70] ss:$8 sps:$4 sm:$0xff]  }
  0x17   : > { %431 = vmatpush1.bf16.msra.mxu0 %v720_v6 }
  0x18   : > { %432 = vmatprep.subr.bf16.mxu0 %v721_v7 }
  0x1b   : > { %433 = vmatpush1.bf16.msra.mxu0 %v723_v8 }
  0x1c   : > { %434 = vmatprep.subr.bf16.mxu0 %v724_v9 }
  0x1f   : > { %435 = vmatpush1.bf16.msra.mxu0 %v726_v10 }
  0x20   : > { %436 = vmatprep.subr.bf16.mxu0 %v727_v11 }
  0x23   : > { %437 = vmatpush1.bf16.msra.mxu0 %v729_v12 }
  0x24   : > { %438 = vmatprep.subr.bf16.mxu0 %v730_v13 }
  0x27   : > { %439 = vmatpush1.bf16.msra.mxu0 %v732_v14 }
  0x28   : > { %440 = vmatprep.subr.bf16.mxu0 %v733_v15 }
  0x2b   : > { %441 = vmatpush1.bf16.msra.mxu0 %v735_v16 }
  0x2c   : > { %442 = vmatprep.subr.bf16.mxu0 %v736_v17 }
  0x2f   : > { %443 = vmatpush1.bf16.msra.mxu0 %v738_v18 }
  0x32   : > { %461 = vmatmul.mubr.bf16.vlgmr.msra.gmra.mrb[0].mxu0 %v739_v19 }
  0x87   : > { %v491_v20 = vpop.permute.xlu0 %490 }
  0x8b   : > { %v496_v24 = vpop.permute.xlu0 %495 }
 0x105   : > { %v462_v21 = vpop.f32.mrb[0].mxu0 }
 0x106   : > { %v498_v22 = vadd.f32 %v491_v20, %v462_v21  ;;  %v464_v23 = vpop.f32.mrb[1].mxu0 }
 0x107   : > { %v499_v25 = vadd.f32 %v491_v20, %v464_v23  ;;  %v466_v26 = vpop.f32.mrb[2].mxu0 }
 0x108   : > { %502 = vst [vmem:[%s308_s29] sm:$0xff] %v498_v22  ;;  %v500_v27 = vadd.f32 %v496_v24, %v466_v26  ;;  %v468_v28 = vpop.f32.mrb[3].mxu0 }
 0x109   : > { %503 = vst [vmem:[%s308_s29 + $0x8] sm:$0xff] %v499_v25  ;;  %v501_v29 = vadd.f32 %v496_v24, %v468_v28 }
 0x10a   : > { %504 = vst [vmem:[%s308_s29 + $0x10] sm:$0xff] %v500_v27 }
 0x10b   : > { %505 = vst [vmem:[%s308_s29 + $0x18] sm:$0xff] %v501_v29 }
 0x10c PF: > { %s13_s14 = sadd.s32 1, %s762_s14   ;;  %s853_s12 = smov %s758_s13 }
 0x10d   : > { %p10_p5 = scmp.ge.s32.totalorder %s13_s14, 4   ;;  %s854_s13 = smov %s856_s15 }
 0x10f   :  { %12 = sbr.rel (!%p10_p5) target bundleno = 2 (0x2), region = 76 }

</bundles_post_ra>
